<compile_context>
chip_gen: v5e
topology: v5e:2x2
jax: 0.10.0
libtpu: 0.0.40
codegen_flags: <defaults>
</compile_context>

<pallas_src>
import functools

import jax
import jax.numpy as jnp
from jax.experimental import pallas as pl
from jax.experimental.pallas import tpu as pltpu


def _concat_residual_kernel(x_ref, h_ref, w_ref, b_ref, o_ref, *, c_in):
    # Block views (batch dim squeezed by BlockSpec):
    #   x_ref: (c_in,  TL)   h_ref/o_ref: (c_out, TL)
    #   w_ref: (c_new, c_in) scale-folded 1x1 conv weight
    #   b_ref: (c_new, 1)    bias column (lane-broadcast)
    x = x_ref[...].astype(jnp.float32)
    h = h_ref[...].astype(jnp.float32)

    # Pass-through channels: exact f32 VPU add (identity is NOT routed through
    # the MXU, so out[:c_in] == h[:c_in] + x bit-exactly for f32 inputs).
    o_ref[:c_in, :] = (h[:c_in, :] + x).astype(o_ref.dtype)

    # New channels: kernel_size=1 conv == contraction over c_in channels.
    w = w_ref[...]
    if c_in <= 32:
        # Tiny contraction -> unrolled VPU FMAs (exact f32, skips MXU).
        y = w[:, 0:1] * x[0:1, :]
        for c in range(1, c_in):
            y = y + w[:, c:c + 1] * x[c:c + 1, :]
    else:
        y = jnp.dot(w, x, preferred_element_type=jnp.float32,
                    precision=jax.lax.Precision.HIGHEST)
    o_ref[c_in:, :] = (h[c_in:, :] + y + b_ref[...]).astype(o_ref.dtype)


def _residual_add_kernel(h_ref, x_ref, o_ref):
    # ch_out == ch_in branch: plain residual add (f32 accumulate for bf16 IO).
    o_ref[...] = (h_ref[...].astype(jnp.float32)
                  + x_ref[...].astype(jnp.float32)).astype(o_ref.dtype)


def _pick_tile_l(l, max_tile=2048):
    """Largest multiple of 128 that divides L (capped at max_tile); full L if
    L is not a multiple of 128 (full-extent block stays legal)."""
    if l % 128 != 0:
        return l
    tile = min(l, max_tile)
    while l % tile != 0:
        tile -= 128
    return tile


def concat_residual(h, x, weight=None, bias=None, *, scale=1.0, max_tile_l=2048):
    """Pallas forward of ConcatResidual.

    h:      (N, ch_out, L)
    x:      (N, ch_in,  L), ch_out >= ch_in
    weight: (ch_out - ch_in, ch_in, 1) stored (equalized) 1x1 conv weight
    bias:   (ch_out - ch_in,)
    scale:  equalized-lr scale of the conv (may be a traced value).
    """
    n, c_in, l = x.shape
    n_h, c_out, l_h = h.shape
    assert n_h == n and l_h == l and c_out >= c_in
    out_dtype = h.dtype
    tl = _pick_tile_l(l, max_tile_l)
    grid = (n, l // tl)
    itemsize = h.dtype.itemsize

    if c_out == c_in:
        # self.net is None -> h + x.  Native layout, tiled, h aliased to out.
        cost = pl.CostEstimate(
            flops=n * c_out * l, transcendentals=0,
            bytes_accessed=3 * n * c_out * l * itemsize)
        return pl.pallas_call(
            _residual_add_kernel,
            out_shape=jax.ShapeDtypeStruct((n, c_out, l), out_dtype),
            grid=grid,
            in_specs=[pl.BlockSpec((None, c_out, tl), lambda b, j: (b, 0, j)),
                      pl.BlockSpec((None, c_in, tl), lambda b, j: (b, 0, j))],
            out_specs=pl.BlockSpec((None, c_out, tl), lambda b, j: (b, 0, j)),
            compiler_params=pltpu.CompilerParams(
                dimension_semantics=("parallel", "parallel")),
            cost_estimate=cost,
            input_output_aliases={0: 0},
        )(h, x)

    c_new = c_out - c_in
    assert weight.shape == (c_new, c_in, 1)

    # Fold the equalized-lr scale into the weight once (conv is linear);
    # reshape the bias to a lane-broadcastable column.  Both get constant
    # index_maps below, so they are DMA'd to VMEM once.
    w_scaled = weight[:, :, 0].astype(jnp.float32) * scale          # (c_new, c_in)
    b_col = bias.astype(jnp.float32).reshape(c_new, 1)              # (c_new, 1)

    cost = pl.CostEstimate(
        flops=2 * c_new * c_in * n * l + c_out * n * l,
        transcendentals=0,
        bytes_accessed=(n * c_in * l + 2 * n * c_out * l) * itemsize)

    return pl.pallas_call(
        functools.partial(_concat_residual_kernel, c_in=c_in),
        out_shape=jax.ShapeDtypeStruct((n, c_out, l), out_dtype),
        grid=grid,
        in_specs=[
            pl.BlockSpec((None, c_in, tl), lambda b, j: (b, 0, j)),   # x
            pl.BlockSpec((None, c_out, tl), lambda b, j: (b, 0, j)),  # h
            pl.BlockSpec((c_new, c_in), lambda b, j: (0, 0)),         # W*scale
            pl.BlockSpec((c_new, 1), lambda b, j: (0, 0)),            # bias col
        ],
        out_specs=pl.BlockSpec((None, c_out, tl), lambda b, j: (b, 0, j)),
        compiler_params=pltpu.CompilerParams(
            dimension_semantics=("parallel", "parallel")),
        cost_estimate=cost,
        input_output_aliases={1: 0},        # h's buffer may be reused for out
    )(x, h, w_scaled, b_col)


def _init_concat_residual_params(key, ch_in, ch_out):
    """Deterministic init matching ConcatResidual.__init__ with equalized=True,
    spectral=False, init='kaiming_normal' (act_alpha=-1 -> kaiming a=1)."""
    c_new = ch_out - ch_in
    gain = jnp.sqrt(2.0 / (1.0 + 1.0 ** 2))          # leaky_relu gain, a=1
    fan_in = ch_in * 1                               # kernel_size = 1
    std = gain / jnp.sqrt(jnp.float32(fan_in))
    w = std * jax.random.normal(key, (c_new, ch_in, 1), dtype=jnp.float32)
    scale = jnp.sqrt(jnp.mean(w ** 2))               # equalized=True
    w = w / scale                                    # stored weight
    b = jnp.zeros((c_new,), dtype=jnp.float32)       # bias zeroed in __init__
    return w, b, scale


if __name__ == "__main__":
    # Small config: ch_in=4, ch_out=8, batch=2, L=4096 -> grid (2, 2), 2048-lane tiles.
    N, CH_IN, CH_OUT, L = 2, 4, 8, 4096

    key = jax.random.PRNGKey(0)
    kh, kx, kw = jax.random.split(key, 3)

    h = jax.random.normal(kh, (N, CH_OUT, L), dtype=jnp.float32)
    x = jax.random.normal(kx, (N, CH_IN, L), dtype=jnp.float32)
    weight, bias, scale = _init_concat_residual_params(kw, CH_IN, CH_OUT)

    # Reference (plain JAX), computed before the kernel (h may be aliased):
    #   y   = conv1d_1x1(x * scale, stored_weight) + bias
    #   ref = h + cat([x, y], dim=1)
    y_ref = (jnp.einsum("oc,ncl->nol", weight[:, :, 0] * scale, x,
                        precision=jax.lax.Precision.HIGHEST)
             + bias[None, :, None])
    ref = jax.block_until_ready(h + jnp.concatenate([x, y_ref], axis=1))

    out = jax.block_until_ready(concat_residual(h, x, weight, bias, scale=scale))
    assert out.shape == (N, CH_OUT, L), out.shape
    assert jnp.allclose(out, ref, atol=1e-4, rtol=1e-4)

    # Also exercise the ch_out == ch_in branch (net is None -> h + x).
    h_eq = jax.random.normal(kh, (N, CH_IN, L), dtype=jnp.float32)
    ref_eq = jax.block_until_ready(h_eq + x)
    out_eq = jax.block_until_ready(concat_residual(h_eq, x))
    assert jnp.allclose(out_eq, ref_eq, atol=1e-6, rtol=1e-6)

    print("KERNEL_OK")
</pallas_src>

<mosaic_0001>
module attributes {stable_mosaic.version = 11 : i64} {
  func.func @_concat_residual_kernel(%arg0: i32, %arg1: i32, %arg2: memref<1x4x2048xf32, #tpu.memory_space<vmem>>, %arg3: memref<1x8x2048xf32, #tpu.memory_space<vmem>>, %arg4: memref<4x4xf32, #tpu.memory_space<vmem>>, %arg5: memref<4x1xf32, #tpu.memory_space<vmem>>, %arg6: memref<1x8x2048xf32, #tpu.memory_space<vmem>>) attributes {dimension_semantics = [#tpu.dimension_semantics<parallel>, #tpu.dimension_semantics<parallel>], iteration_bounds = array<i64: 2, 2>, scalar_prefetch = 0 : i64, scratch_operands = 0 : i64, tpu.core_type = #tpu.core_type<tc>, window_params = [{transform_indices = @transform_0, window_bounds = array<i64: 1, 4, 2048>}, {transform_indices = @transform_1, window_bounds = array<i64: 1, 8, 2048>}, {pipeline_mode = #tpu.pipeline_mode<synchronous>, transform_indices = @transform_2, window_bounds = array<i64: 4, 4>}, {pipeline_mode = #tpu.pipeline_mode<synchronous>, transform_indices = @transform_3, window_bounds = array<i64: 4, 1>}, {transform_indices = @transform_4, window_bounds = array<i64: 1, 8, 2048>}]} {
    %c0 = arith.constant 0 : index
    %c0_0 = arith.constant 0 : index
    %c0_1 = arith.constant 0 : index
    %0 = vector.load %arg2[%c0, %c0_0, %c0_1] : memref<1x4x2048xf32, #tpu.memory_space<vmem>>, vector<1x4x2048xf32>
    %1 = vector.shape_cast %0 : vector<1x4x2048xf32> to vector<4x2048xf32>
    %c0_2 = arith.constant 0 : index
    %c0_3 = arith.constant 0 : index
    %c0_4 = arith.constant 0 : index
    %2 = vector.load %arg3[%c0_2, %c0_3, %c0_4] : memref<1x8x2048xf32, #tpu.memory_space<vmem>>, vector<1x8x2048xf32>
    %3 = vector.shape_cast %2 : vector<1x8x2048xf32> to vector<8x2048xf32>
    %4 = vector.extract_strided_slice %3 {offsets = [0, 0], sizes = [4, 2048], strides = [1, 1]} : vector<8x2048xf32> to vector<4x2048xf32>
    %5 = arith.addf %4, %1 : vector<4x2048xf32>
    %c0_5 = arith.constant 0 : index
    %c0_6 = arith.constant 0 : index
    %c0_7 = arith.constant 0 : index
    %6 = vector.load %arg6[%c0_5, %c0_6, %c0_7] : memref<1x8x2048xf32, #tpu.memory_space<vmem>>, vector<1x4x2048xf32>
    %7 = vector.shape_cast %6 : vector<1x4x2048xf32> to vector<4x2048xf32>
    %8 = vector.shape_cast %5 : vector<4x2048xf32> to vector<1x4x2048xf32>
    tpu.vector_store %arg6[%c0_5, %c0_6, %c0_7], %8 {strides = array<i32>} : memref<1x8x2048xf32, #tpu.memory_space<vmem>>, vector<1x4x2048xf32>,
    %c0_8 = arith.constant 0 : index
    %c0_9 = arith.constant 0 : index
    %9 = vector.load %arg4[%c0_8, %c0_9] : memref<4x4xf32, #tpu.memory_space<vmem>>, vector<4x4xf32>
    %10 = vector.extract_strided_slice %9 {offsets = [0, 0], sizes = [4, 1], strides = [1, 1]} : vector<4x4xf32> to vector<4x1xf32>
    %11 = vector.extract_strided_slice %1 {offsets = [0, 0], sizes = [1, 2048], strides = [1, 1]} : vector<4x2048xf32> to vector<1x2048xf32>
    %12 = vector.broadcast %10 : vector<4x1xf32> to vector<4x2048xf32>
    %13 = vector.broadcast %11 : vector<1x2048xf32> to vector<4x2048xf32>
    %14 = arith.mulf %12, %13 : vector<4x2048xf32>
    %15 = vector.extract_strided_slice %9 {offsets = [0, 1], sizes = [4, 1], strides = [1, 1]} : vector<4x4xf32> to vector<4x1xf32>
    %16 = vector.extract_strided_slice %1 {offsets = [1, 0], sizes = [1, 2048], strides = [1, 1]} : vector<4x2048xf32> to vector<1x2048xf32>
    %17 = vector.broadcast %15 : vector<4x1xf32> to vector<4x2048xf32>
    %18 = vector.broadcast %16 : vector<1x2048xf32> to vector<4x2048xf32>
    %19 = arith.mulf %17, %18 : vector<4x2048xf32>
    %20 = arith.addf %14, %19 : vector<4x2048xf32>
    %21 = vector.extract_strided_slice %9 {offsets = [0, 2], sizes = [4, 1], strides = [1, 1]} : vector<4x4xf32> to vector<4x1xf32>
    %22 = vector.extract_strided_slice %1 {offsets = [2, 0], sizes = [1, 2048], strides = [1, 1]} : vector<4x2048xf32> to vector<1x2048xf32>
    %23 = vector.broadcast %21 : vector<4x1xf32> to vector<4x2048xf32>
    %24 = vector.broadcast %22 : vector<1x2048xf32> to vector<4x2048xf32>
    %25 = arith.mulf %23, %24 : vector<4x2048xf32>
    %26 = arith.addf %20, %25 : vector<4x2048xf32>
    %27 = vector.extract_strided_slice %9 {offsets = [0, 3], sizes = [4, 1], strides = [1, 1]} : vector<4x4xf32> to vector<4x1xf32>
    %28 = vector.extract_strided_slice %1 {offsets = [3, 0], sizes = [1, 2048], strides = [1, 1]} : vector<4x2048xf32> to vector<1x2048xf32>
    %29 = vector.broadcast %27 : vector<4x1xf32> to vector<4x2048xf32>
    %30 = vector.broadcast %28 : vector<1x2048xf32> to vector<4x2048xf32>
    %31 = arith.mulf %29, %30 : vector<4x2048xf32>
    %32 = arith.addf %26, %31 : vector<4x2048xf32>
    %33 = vector.extract_strided_slice %3 {offsets = [4, 0], sizes = [4, 2048], strides = [1, 1]} : vector<8x2048xf32> to vector<4x2048xf32>
    %34 = arith.addf %33, %32 : vector<4x2048xf32>
    %c0_10 = arith.constant 0 : index
    %c0_11 = arith.constant 0 : index
    %35 = vector.load %arg5[%c0_10, %c0_11] : memref<4x1xf32, #tpu.memory_space<vmem>>, vector<4x1xf32>
    %36 = vector.broadcast %35 : vector<4x1xf32> to vector<4x2048xf32>
    %37 = arith.addf %34, %36 : vector<4x2048xf32>
    %c0_12 = arith.constant 0 : index
    %c4 = arith.constant 4 : index
    %c0_13 = arith.constant 0 : index
    %38 = vector.load %arg6[%c0_12, %c4, %c0_13] : memref<1x8x2048xf32, #tpu.memory_space<vmem>>, vector<1x4x2048xf32>
    %39 = vector.shape_cast %38 : vector<1x4x2048xf32> to vector<4x2048xf32>
    %40 = vector.shape_cast %37 : vector<4x2048xf32> to vector<1x4x2048xf32>
    tpu.vector_store %arg6[%c0_12, %c4, %c0_13], %40 {strides = array<i32>} : memref<1x8x2048xf32, #tpu.memory_space<vmem>>, vector<1x4x2048xf32>,
    return
  }
  func.func @transform_0(%arg0: i32, %arg1: i32) -> (i32, i32, i32) {
    %c0_i32 = arith.constant 0 : i32
    %c0_i32_0 = arith.constant 0 : i32
    return %arg0, %c0_i32, %arg1 : i32, i32, i32
  }
  func.func @transform_1(%arg0: i32, %arg1: i32) -> (i32, i32, i32) {
    %c0_i32 = arith.constant 0 : i32
    %c0_i32_0 = arith.constant 0 : i32
    return %arg0, %c0_i32, %arg1 : i32, i32, i32
  }
  func.func @transform_2(%arg0: i32, %arg1: i32) -> (i32, i32) {
    %c0_i32 = arith.constant 0 : i32
    %c0_i32_0 = arith.constant 0 : i32
    %c0_i32_1 = arith.constant 0 : i32
    return %c0_i32, %c0_i32_0 : i32, i32
  }
  func.func @transform_3(%arg0: i32, %arg1: i32) -> (i32, i32) {
    %c0_i32 = arith.constant 0 : i32
    %c0_i32_0 = arith.constant 0 : i32
    %c0_i32_1 = arith.constant 0 : i32
    return %c0_i32, %c0_i32_0 : i32, i32
  }
  func.func @transform_4(%arg0: i32, %arg1: i32) -> (i32, i32, i32) {
    %c0_i32 = arith.constant 0 : i32
    %c0_i32_0 = arith.constant 0 : i32
    return %arg0, %c0_i32, %arg1 : i32, i32, i32
  }
}

</mosaic_0001>

<bundles_post_ra>
// kernel: tpu_custom_call.1
= control target key start
LH: loop header
LB: loop body
LE: loop exit
PB: predicated region body
PF: predicated region fallthrough
CT: control target
= control target key end

     0   :  { %9 = vsyncpa [#allocation3], 0  ;;  %s1805_s0 = inlined_call_operand.vmem [shape: f32[2,4,4096], index: 0, kind: input, shape index: {}]   ;;  %s1806_s1 = inlined_call_operand.hbm [shape: f32[2,8,4096], index: 1, kind: input, shape index: {}, may-alias: {1,4}]   ;;  %s1807_s2 = inlined_call_operand.vmem [shape: f32[4,4], index: 2, kind: input, shape index: {}]   ;;  %s1808_s3 = inlined_call_operand.vmem [shape: f32[4,1], index: 3, kind: input, shape index: {}]   ;;  %s1809_s4 = inlined_call_operand.hbm [shape: f32[2,8,4096], index: 4, kind: output, shape index: {}, may-alias: {1,4}]  }
   0x1   :  { %11 = vsyncpa [#allocation3 + $0x1], 0 }
   0x2   :  { %12 = vsyncpa [#allocation4], 0 }
   0x3   :  { %14 = vsyncpa [#allocation4 + $0x1], 0  ;;  %s1195_s15 = smov 0   ;;  %s1197_s16 = smov 0  }
   0x4   :  { %s1199_s17 = smov 0   ;;  %s1201_s18 = smov 0  }
   0x5   :  { %s1203_s19 = smov 0   ;;  %s1205_s20 = smov 0  }
   0x6   :  { %s1207_s21 = smov 0   ;;  %s1209_s22 = smov 0  }
   0x7 LB: > { %s928_s23 = sadd.s32 4294967295, %s1164_s22   ;;  %s929_s24 = sadd.s32 4294967294, %s1164_s22   ;;  %s1164_s22 = sphi %s1209_s22, %s20_s22   ;;  %s1160_s21 = sphi %s1207_s21, %s1935_s21   ;;  %s1156_s20 = sphi %s1205_s20, %s1934_s20   ;;  %s1152_s19 = sphi %s1203_s19, %s1933_s19   ;;  %s1148_s18 = sphi %s1201_s18, %s1932_s18   ;;  %s1144_s17 = sphi %s1199_s17, %s1931_s17   ;;  %s1140_s16 = sphi %s1197_s16, %s1930_s16   ;;  %s1136_s15 = sphi %s1195_s15, %s1929_s15  }
   0x8   : > { %s29_s25 = sadd.s32 1, %s1156_s20  ;;  %s32_s26 = sadd.s32 1, %s1160_s21 }
   0x9   : > { %p30_p0 = scmp.ge.s32.totalorder %s29_s25, 2  ;;  %s69_s27 = sadd.s32 1, %s1144_s17 }
   0xa   : > { %p76_p1 = scmp.ne.s32.totalorder %s1144_s17, %s1140_s16  ;;  %p77_p2 = scmp.eq.s32.totalorder %s1164_s22, 0 }
   0xb   : > { %s1937_s25 = smov (%p30_p0, %s29_s25), 0  ;;  %s1939_s26 = smov (!%p30_p0, %s32_s26), %s1160_s21 }
   0xc   : > { %1836 = sst [smem:[#allocation8_spill]] %s1937_s25  ;;  %s65_s28 = ssub.s32 %s1156_s20, %s1937_s25 }
   0xd   : > { %p1248_p3 = por %p77_p2, %p76_p1  ;;  %p34_p4 = scmp.ge.s32.totalorder %s1939_s26, 2 }
   0xe   : > { %p82_p5 = scmp.ne.s32.totalorder %s1140_s16, %s1136_s15  ;;  %p83_p6 = scmp.eq.s32.totalorder %s928_s23, 0 }
   0xf   : > { %p150_p7 = scmp.eq.s32.totalorder %s928_s23, 3  ;;  %s1941_s26 = smov (%p34_p4, %s1939_s26), 0 }
  0x10   : > { %1838 = sst [smem:[#allocation9_spill]] %s1941_s26  ;;  %p1256_p8 = por %p83_p6, %p82_p5 }
  0x11   : > { %p1260_p9 = por %p150_p7, %p76_p1  ;;  %s64_s6 = ssub.s32 %s1160_s21, %s1941_s26 }
  0x12   : > { %p156_p10 = scmp.eq.s32.totalorder %s929_s24, 3  ;;  %s66_s7 = sor.u32 %s65_s28, %s64_s6 }
  0x13   : > { %p67_p11 = scmp.eq.s32.totalorder %s66_s7, 0  ;;  %p960_p13 = scmp.lt.s32.totalorder %s1164_s22, 4 }
  0x14   : > { %p1266_p12 = por %p156_p10, %p82_p5  ;;  %s195_s9 = sand.u32 1, %s1144_s17  }
  0x15   : > { %s1273_s10 = scalar_select %p67_p11, %s1144_s17, %s69_s27  }
  0x16   : > { %s932_s11 = sshll.u32 %s195_s9, 7  ;;  %s933_s12 = sshll.u32 %s1156_s20, 4 }
  0x17   : > { %s934_s13 = sshll.u32 %s1160_s21, 5  ;;  %s199_s14 = scalar_lea.vmem [#allocation2], %s932_s11 }
  0x18   : > { %s210_s23 = sshll.u32 %s199_s14, 4  ;;  %s204_s26 = sadd.s32 %s934_s13, %s933_s12  ;;  %s211_s23 = int_to_ptr.vmem [resolvable:$true] %s210_s23 }
  0x19   : > { %s935_s24 = sshll.u32 %s204_s26, 3  ;;  %p953_p0 = pnand %p960_p13, %p1248_p3 }
  0x1a   : > { %s206_s7 = scalar_lea.hbm %s1806_s1, %s935_s24  ;;  %p936_p1 = scmp.ge.s32.totalorder %s1164_s22, 1 }
  0x1b   : > { %s208_s25 = sshll.u32 %s206_s7, 4  ;;  %p215_p2 = scmp.lt.s32.totalorder %s1164_s22, 5  ;;  %s209_s25 = int_to_ptr.hbm [resolvable:$true] %s208_s25 }
  0x1c   : > { %s196_s27 = scalar_lea.sflag [#allocation3], %s195_s9 }
  0x1d   : > { %955 = dma.hbm_to_vmem [thread:$0]  (!%p953_p0), %s209_s25, 2048, %s211_s23, %s196_s27  }
  0x1e   : > { %p216_p4 = pnand %p936_p1, %p215_p2 }
  0x20   : > { %219 = sbr.rel (%p216_p4) target bundleno = 218 (0xda), region = 36 }
  0x25   : > { %s1285_s11 = sand.u32 1, %s1140_s16  }
  0x26   : > { %s937_s26 = sshll.u32 %s1285_s11, 7  ;;  %s222_s29 = scalar_lea.sflag [#allocation3], %s1285_s11 }
  0x27   : > { %s1291_s12 = scalar_lea.vmem [#allocation2], %s937_s26 }
  0x28   : > { %1127 = dma.done.wait (%p1256_p8), %s222_s29, 2048  }
  0x29   : > { %1129 = vsyncadd (%p1256_p8), %s222_s29, 4294965248  ;;  %v1166_v0 = vmov 0   ;;  %v1167_v1 = vmov 2   ;;  %v379_v2 = vld [vmem:[%s1807_s2] sm:$0xf]  ;;  %v1168_v4 = vmov 1  }
  0x2a   : > { %1030 = vset.pattern.permute.xlu0 %v1166_v0  ;;  %1032 = vset.pattern.permute.xlu1 %v1167_v1  ;;  %v765_v3 = vld [vmem:[%s1808_s3] sm:$0xf]  ;;  %v1169_v5 = vmov 3   ;;  %s1304_s30 = sshll.u32 %s1148_s18, 4  ;;  %p261_p3 = scmp.lt.s32.totalorder %s1152_s19, 1  ;;  %v1460_v57 = vld [vmem:[%s1291_s12] sm:$0xff] }
  0x2b   : > { %1034 = vset.pattern.permute.xlu2 %v1166_v0  ;;  %382 = vperm.xlu0 %1030, %v379_v2   ;;  %p263_p5 = scmp.lt.s32.totalorder %s1304_s30, 31  ;;  %1857 = vst [vmem:[#allocation25_spill] sm:$0xff] %v1460_v57  ;;  %v1466_v54 = vld [vmem:[%s1291_s12 + $0x10] sm:$0xff]  ;;  %s1511_s18 = scalar_lea.vmem [#allocation5], %s937_s26 }
  0x2c   : > { %534 = vperm.xlu1 %1032, %v379_v2   ;;  %768 = vperm.xlu2 %1034, %v765_v3   ;;  %s262_s23 = scalar_select %p261_p3, %s1152_s19, 1  ;;  %1859 = vst [vmem:[#allocation27_spill] sm:$0xff] %v1466_v54 }
  0x2d   : > { %s264_s24 = scalar_select %p263_p5, %s1304_s30, 31 }
  0x2e   : > { %s940_s28 = sshll.u32 %s262_s23, 5  ;;  %s944_s26 = sshll.u32 %s1152_s19, 5 }
  0x2f   : > { %s266_s6 = sadd.s32 %s940_s28, %s264_s24  ;;  %s820_s23 = sshll.u32 %s1511_s18, 4  ;;  %s821_s23 = int_to_ptr.vmem [resolvable:$true] %s820_s23 }
  0x30   : > { %s941_s7 = sshll.u32 %s266_s6, 2  ;;  %s805_s24 = scalar_lea.sflag [#allocation4], %s1285_s11 }
  0x31   : > { %s268_s25 = scalar_lea.vmem %s1805_s0, %s941_s7  ;;  %s1086_s29 = scalar_lea.hbm %s1809_s4, 512 }
  0x32   : > { %v1313_v6 = vld [vmem:[%s268_s25] sm:$0xff]  ;;  %v1315_v7 = vld [vmem:[%s268_s25 + $0x8] sm:$0xff]  ;;  %v1317_v8 = vld [vmem:[%s268_s25 + $0x10] sm:$0xff] }
  0x33   : > { %1031 = vset.pattern.permute.xlu0 %v1168_v4  ;;  %v1319_v9 = vld [vmem:[%s268_s25 + $0x18] sm:$0xff]  ;;  %304 = vst [vmem:[#allocation1] ss:$2 sm:$0xff] %v1313_v6  ;;  %v1322_v10 = vld [vmem:[%s268_s25 + $0x20] sm:$0xff]  ;;  %v1324_v11 = vld [vmem:[%s268_s25 + $0x28] sm:$0xff]  ;;  %v385_v12 = vperm.slane %v1313_v6, 0 }
  0x34   : > { %1033 = vset.pattern.permute.xlu1 %v1169_v5  ;;  %450 = vperm.xlu0 %1031, %v379_v2   ;;  %1842 = vst [vmem:[#allocation10_spill] sm:$0xff] %v1322_v10  ;;  %v386_v13 = vperm.slane %v1313_v6, 4  ;;  %v1329_v14 = vld [vmem:[%s268_s25 + $0x30] sm:$0xff]  ;;  %v1331_v15 = vld [vmem:[%s268_s25 + $0x38] sm:$0xff]  ;;  %v387_v16 = vperm.slane %v1315_v7, 0  ;;  %v388_v17 = vperm.slane %v1315_v7, 4 }
  0x35   : > { %618 = vperm.xlu1 %1033, %v379_v2   ;;  %1843 = vst [vmem:[#allocation11_spill] sm:$0xff] %v1324_v11  ;;  %v389_v18 = vperm.slane %v1317_v8, 0  ;;  %v390_v19 = vperm.slane %v1317_v8, 4  ;;  %v391_v20 = vperm.slane %v1319_v9, 0  ;;  %v392_v21 = vperm.slane %v1319_v9, 4 }
  0x36   : > { %306 = vst [vmem:[#allocation1 + $0x10] ss:$2 sm:$0xff] %v1315_v7  ;;  %v393_v22 = vperm.slane %v1322_v10, 0  ;;  %v394_v23 = vperm.slane %v1322_v10, 4  ;;  %v395_v24 = vperm.slane %v1324_v11, 0  ;;  %v396_v25 = vperm.slane %v1324_v11, 4 }
  0x37   : > { %1844 = vst [vmem:[#allocation12_spill] sm:$0xff] %v1329_v14  ;;  %v397_v26 = vperm.slane %v1329_v14, 0  ;;  %v398_v27 = vperm.slane %v1329_v14, 4  ;;  %v399_v28 = vperm.slane %v1331_v15, 0  ;;  %v400_v29 = vperm.slane %v1331_v15, 4 }
  0x38   : > { %1845 = vst [vmem:[#allocation13_spill] sm:$0xff] %v1331_v15  ;;  %v1349_v30 = vperm.slane %v385_v12, 0  ;;  %v1351_v31 = vperm.slane %v386_v13, 0  ;;  %v1353_v32 = vperm.slane %v387_v16, 0  ;;  %v1355_v33 = vperm.slane %v388_v17, 0 }
  0x39   : > { %308 = vst [vmem:[#allocation1 + $0x20] ss:$2 sm:$0xff] %v1317_v8  ;;  %v1357_v34 = vperm.slane %v389_v18, 0  ;;  %v1359_v35 = vperm.slane %v390_v19, 0  ;;  %v1361_v36 = vperm.slane %v391_v20, 0  ;;  %v1363_v37 = vperm.slane %v392_v21, 0 }
  0x3a   : > { %310 = vst [vmem:[#allocation1 + $0x30] ss:$2 sm:$0xff] %v1319_v9  ;;  %v1365_v38 = vperm.slane %v393_v22, 0  ;;  %v1367_v39 = vperm.slane %v394_v23, 0  ;;  %v1369_v40 = vperm.slane %v395_v24, 0  ;;  %v1371_v41 = vperm.slane %v396_v25, 0 }
  0x3b   : > { %v1373_v42 = vperm.slane %v397_v26, 0  ;;  %v1375_v43 = vperm.slane %v398_v27, 0  ;;  %v1377_v44 = vperm.slane %v399_v28, 0  ;;  %v1379_v45 = vperm.slane %v400_v29, 0 }
  0x3c   : > { %1035 = vset.pattern.permute.xlu0 %v1166_v0  ;;  %v537_v46 = vperm.slane %v1313_v6, 2  ;;  %v538_v47 = vperm.slane %v1313_v6, 6  ;;  %v539_v48 = vperm.slane %v1315_v7, 2  ;;  %v540_v49 = vperm.slane %v1315_v7, 6 }
  0x3d   : > { %v541_v50 = vperm.slane %v1317_v8, 2  ;;  %v542_v51 = vperm.slane %v1317_v8, 6  ;;  %v543_v52 = vperm.slane %v1319_v9, 2  ;;  %v544_v53 = vperm.slane %v1319_v9, 6 }
  0x3e   : > { %v453_v58 = vperm.slane %v1313_v6, 1  ;;  %v454_v59 = vperm.slane %v1313_v6, 5  ;;  %v455_v60 = vperm.slane %v1315_v7, 1  ;;  %v456_v61 = vperm.slane %v1315_v7, 5 }
  0x3f   : > { %v457_v62 = vperm.slane %v1317_v8, 1  ;;  %v458_v63 = vperm.slane %v1317_v8, 5  ;;  %v459_v0 = vperm.slane %v1319_v9, 1  ;;  %v460_v1 = vperm.slane %v1319_v9, 5 }
  0x40   : > { %v461_v2 = vperm.slane %v1322_v10, 1  ;;  %v462_v3 = vperm.slane %v1322_v10, 5  ;;  %v463_v4 = vperm.slane %v1324_v11, 1  ;;  %v464_v5 = vperm.slane %v1324_v11, 5 }
  0x41   : > { %v465_v12 = vperm.slane %v1329_v14, 1  ;;  %v466_v13 = vperm.slane %v1329_v14, 5  ;;  %v467_v16 = vperm.slane %v1331_v15, 1  ;;  %v468_v17 = vperm.slane %v1331_v15, 5 }
  0x42   : > { %v1409_v18 = vperm.slane %v453_v58, 1  ;;  %v1411_v19 = vperm.slane %v454_v59, 1  ;;  %v1413_v20 = vperm.slane %v455_v60, 1  ;;  %v1415_v21 = vperm.slane %v456_v61, 1 }
  0x43   : > { %v1417_v22 = vperm.slane %v457_v62, 1  ;;  %v1419_v23 = vperm.slane %v458_v63, 1  ;;  %v1421_v24 = vperm.slane %v459_v0, 1  ;;  %v1423_v25 = vperm.slane %v460_v1, 1 }
  0x44   : > { %v1425_v26 = vperm.slane %v461_v2, 1  ;;  %v1427_v27 = vperm.slane %v462_v3, 1  ;;  %v1429_v28 = vperm.slane %v463_v4, 1  ;;  %v1431_v29 = vperm.slane %v464_v5, 1 }
  0x45   : > { %1846 = vst [vmem:[#allocation14_spill] sm:$0xff] %v1419_v23  ;;  %v1433_v58 = vperm.slane %v465_v12, 1  ;;  %v1435_v59 = vperm.slane %v466_v13, 1  ;;  %v1437_v60 = vperm.slane %v467_v16, 1  ;;  %v1439_v61 = vperm.slane %v468_v17, 1 }
  0x46   : > { %1847 = vst [vmem:[#allocation15_spill] sm:$0xff] %v1421_v24  ;;  %v549_v62 = vperm.slane %v1329_v14, 2  ;;  %v550_v63 = vperm.slane %v1329_v14, 6  ;;  %v551_v0 = vperm.slane %v1331_v15, 2  ;;  %v552_v1 = vperm.slane %v1331_v15, 6 }
  0x47   : > { %1848 = vst [vmem:[#allocation16_spill] sm:$0xff] %v1423_v25  ;;  %v1445_v2 = vperm.slane %v537_v46, 2  ;;  %v1447_v3 = vperm.slane %v538_v47, 2  ;;  %v1449_v4 = vperm.slane %v539_v48, 2  ;;  %v1451_v5 = vperm.slane %v540_v49, 2  ;;  %v1463_v46 = vld [vmem:[%s1291_s12 + $0x8] sm:$0xff] }
  0x48   : > { %1849 = vst [vmem:[#allocation17_spill] sm:$0xff] %v1425_v26  ;;  %v311_v12 = vld.sshfl [vmem:[#allocation1] sm:$0xff pattern:$0x75316420]  ;;  %v1453_v13 = vperm.slane %v541_v50, 2  ;;  %v1455_v16 = vperm.slane %v542_v51, 2 }
  0x49   : > { %1850 = vst [vmem:[#allocation18_spill] sm:$0xff] %v1427_v27  ;;  %v1457_v17 = vperm.slane %v543_v52, 2  ;;  %v312_v56 = vld.sshfl [vmem:[#allocation1 + $0x8] sm:$0xff pattern:$0x75316420]  ;;  %v347_v51 = vadd.f32 %v311_v12, %v1460_v57  ;;  %v1470_v52 = vperm.slane %v544_v53, 2 }
  0x4a   : > { %1851 = vst [vmem:[#allocation19_spill] sm:$0xff] %v1429_v28  ;;  %v313_v55 = vld.sshfl [vmem:[#allocation1 + $0x10] sm:$0xff pattern:$0x75316420]  ;;  %v1862_v28 = vperm.slane %v1322_v10, 6  ;;  %v1863_v26 = vperm.slane %v1324_v11, 2 }
  0x4b   : > { %1852 = vst [vmem:[#allocation20_spill] sm:$0xff] %v1431_v29  ;;  %v314_v47 = vld.sshfl [vmem:[#allocation1 + $0x18] sm:$0xff pattern:$0x75316420]  ;;  %v1490_v53 = vld [vmem:[%s1291_s12 + $0x20] sm:$0xff]  ;;  %v349_v57 = vadd.f32 %v313_v55, %v1466_v54  ;;  %v1499_v25 = vperm.slane %v549_v62, 2 }
  0x4c   : > { %1853 = vst [vmem:[#allocation21_spill] sm:$0xff] %v1433_v58  ;;  %v315_v48 = vld.sshfl [vmem:[#allocation1 + $0x20] sm:$0xff pattern:$0x75316420]  ;;  %v1861_v58 = vperm.slane %v1322_v10, 2  ;;  %v1483_v27 = vperm.slane %v1862_v28, 2 }
  0x4d   : > { %1854 = vst [vmem:[#allocation22_spill] sm:$0xff] %v1435_v59  ;;  %v316_v49 = vld.sshfl [vmem:[#allocation1 + $0x28] sm:$0xff pattern:$0x75316420]  ;;  %v348_v59 = vadd.f32 %v312_v56, %v1463_v46  ;;  %v1487_v12 = vperm.slane %v1863_v26, 2  ;;  %v351_v28 = vadd.f32 %v315_v48, %v1490_v53  ;;  %v1503_v26 = vperm.slane %v550_v63, 2 }
  0x4e   : > { %1855 = vst [vmem:[#allocation23_spill] sm:$0xff] %v1437_v60  ;;  %v318_v50 = vld.sshfl [vmem:[#allocation1 + $0x38] sm:$0xff pattern:$0x75316420]  ;;  %v1473_v60 = vld [vmem:[%s1291_s12 + $0x18] sm:$0xff]  ;;  %v1479_v29 = vperm.slane %v1861_v58, 2 }
  0x4f   : > { %1856 = vst [vmem:[#allocation24_spill] sm:$0xff] %v1439_v61  ;;  %v317_v61 = vld.sshfl [vmem:[#allocation1 + $0x30] sm:$0xff pattern:$0x75316420]  ;;  %v350_v56 = vadd.f32 %v314_v47, %v1473_v60  ;;  %v1505_v24 = vperm.slane %v551_v0, 2  ;;  %v1507_v23 = vperm.slane %v552_v1, 2 }
  0x50   : > { %1858 = vst [vmem:[#allocation26_spill] sm:$0xff] %v1463_v46  ;;  %v1865_v46 = vperm.slane %v1324_v11, 6  ;;  %v621_v55 = vperm.slane %v1313_v6, 3  ;;  %v622_v62 = vperm.slane %v1313_v6, 7  ;;  %v624_v63 = vperm.slane %v1315_v7, 7  ;;  %v1539_v54 = vld [vmem:[%s1291_s12 + $0x38] sm:$0xff] }
  0x51   : > { %319 = vst [vmem:[#allocation1] ss:$2 sm:$0xff] %v1322_v10  ;;  %v625_v0 = vperm.slane %v1317_v8, 3  ;;  %v1550_v1 = vld [vmem:[%s1291_s12 + $0x40] sm:$0xff] }
  0x52   : > { %1860 = vst [vmem:[#allocation28_spill] sm:$0xff] %v1473_v60  ;;  %v1497_v58 = vperm.slane %v1865_v46, 2  ;;  %v623_v46 = vperm.slane %v1315_v7, 3  ;;  %v1541_v6 = vperm.slane %v621_v55, 3  ;;  %v1547_v60 = vperm.slane %v624_v63, 3 }
  0x53   : > { %320 = vst [vmem:[#allocation1 + $0x10] ss:$2 sm:$0xff] %v1324_v11 }
  0x54   : > { %1864 = vst [vmem:[#allocation29_spill] sm:$0xff] %v1490_v53  ;;  %v1543_v53 = vperm.slane %v622_v62, 3  ;;  %v1545_v7 = vperm.slane %v623_v46, 3  ;;  %v354_v62 = vadd.f32 %v318_v50, %v1539_v54  ;;  %v1556_v46 = vperm.slane %v625_v0, 3  ;;  %v1582_v0 = vld [vmem:[%s1291_s12 + $0x50] sm:$0xff] }
  0x55   : > { %321 = vst [vmem:[#allocation1 + $0x20] ss:$2 sm:$0xff] %v1329_v14 }
  0x56   : > { %322 = vst [vmem:[#allocation1 + $0x30] ss:$2 sm:$0xff] %v1331_v15 }
  0x57   : > { %363 = vst [vmem:[%s1511_s18] sm:$0xf] %v347_v51  ;;  %v1536_v51 = vld [vmem:[%s1291_s12 + $0x30] sm:$0xff] }
  0x58   : > { %364 = vst [vmem:[%s1511_s18 + $0x8] sm:$0xf] %v348_v59  ;;  %v1529_v59 = vld [vmem:[%s1291_s12 + $0x28] sm:$0xff]  ;;  %v323_v47 = vld.sshfl [vmem:[#allocation1] sm:$0xff pattern:$0x75316420]  ;;  %v353_v55 = vadd.f32 %v317_v61, %v1536_v51 }
  0x59   : > { %365 = vst [vmem:[%s1511_s18 + $0x10] sm:$0xf] %v349_v57  ;;  %v324_v48 = vld.sshfl [vmem:[#allocation1 + $0x8] sm:$0xff pattern:$0x75316420]  ;;  %v352_v15 = vadd.f32 %v316_v49, %v1529_v59  ;;  %v355_v50 = vadd.f32 %v323_v47, %v1550_v1 }
  0x5a   : > { %1866 = vst [vmem:[#allocation30_spill] sm:$0xff] %v1529_v59  ;;  %v325_v14 = vld.sshfl [vmem:[#allocation1 + $0x10] sm:$0xff pattern:$0x75316420] }
  0x5b   : > { %1867 = vst [vmem:[#allocation31_spill] sm:$0xff] %v1536_v51  ;;  %v326_v11 = vld.sshfl [vmem:[#allocation1 + $0x18] sm:$0xff pattern:$0x75316420]  ;;  %v1568_v59 = vld [vmem:[%s1291_s12 + $0x48] sm:$0xff] }
  0x5c   : > { %1868 = vst [vmem:[#allocation32_spill] sm:$0xff] %v1539_v54  ;;  %v327_v10 = vld.sshfl [vmem:[#allocation1 + $0x20] sm:$0xff pattern:$0x75316420]  ;;  %v356_v54 = vadd.f32 %v324_v48, %v1568_v59  ;;  %v1612_v48 = vld [vmem:[%s1291_s12 + $0x60] sm:$0xff] }
  0x5d   : > { %1869 = vst [vmem:[#allocation33_spill] sm:$0xff] %v1543_v53  ;;  %v328_v61 = vld.sshfl [vmem:[#allocation1 + $0x28] sm:$0xff pattern:$0x75316420]  ;;  %v359_v51 = vadd.f32 %v327_v10, %v1612_v48  ;;  %v1891_v53 = vld [vmem:[#allocation24_spill] sm:$0xff] }
  0x5e   : > { %1870 = vst [vmem:[#allocation34_spill] sm:$0xff] %v1545_v7  ;;  %v1890_v7 = vld [vmem:[#allocation23_spill] sm:$0xff] }
  0x5f   : > { %1871 = vst [vmem:[#allocation35_spill] sm:$0xff] %v1547_v60 }
  0x60   : > { %1872 = vst [vmem:[#allocation36_spill] sm:$0xff] %v1550_v1  ;;  %v357_v1 = vadd.f32 %v325_v14, %v1582_v0 }
  0x61   : > { %366 = vst [vmem:[%s1511_s18 + $0x18] sm:$0xf] %v350_v56 }
  0x62   : > { %1873 = vst [vmem:[#allocation37_spill] sm:$0xff] %v1556_v46 }
  0x63   : > { %1874 = vst [vmem:[#allocation38_spill] sm:$0xff] %v1568_v59 }
  0x64   : > { %367 = vst [vmem:[%s1511_s18 + $0x20] sm:$0xf] %v351_v28  ;;  %v330_v28 = vld.sshfl [vmem:[#allocation1 + $0x38] sm:$0xff pattern:$0x75316420] }
  0x65   : > { %1875 = vst [vmem:[#allocation39_spill] sm:$0xff] %v1582_v0  ;;  %v1620_v0 = vld [vmem:[%s1291_s12 + $0x68] sm:$0xff] }
  0x66   : > { %368 = vst [vmem:[%s1511_s18 + $0x28] sm:$0xf] %v352_v15 }
  0x67   : > { %369 = vst [vmem:[%s1511_s18 + $0x30] sm:$0xf] %v353_v55 }
  0x68   : > { %1877 = vst [vmem:[#allocation41_spill] sm:$0xff] %v1612_v48  ;;  %v1889_v48 = vld [vmem:[#allocation22_spill] sm:$0xff] }
  0x69   : > { %370 = vst [vmem:[%s1511_s18 + $0x38] sm:$0xf] %v354_v62  ;;  %v360_v62 = vadd.f32 %v328_v61, %v1620_v0  ;;  %v1882_v61 = vld [vmem:[#allocation15_spill] sm:$0xff] }
  0x6a   : > { %1878 = vst [vmem:[#allocation42_spill] sm:$0xff] %v1620_v0  ;;  %v1887_v0 = vld [vmem:[#allocation20_spill] sm:$0xff] }
  0x6b   : > { %371 = vst [vmem:[%s1511_s18 + $0x40] sm:$0xf] %v355_v50 }
  0x6c   : > { %372 = vst [vmem:[%s1511_s18 + $0x48] sm:$0xf] %v356_v54 }
  0x6d   : > { %373 = vst [vmem:[%s1511_s18 + $0x50] sm:$0xf] %v357_v1 }
  0x6e   : > { %375 = vst [vmem:[%s1511_s18 + $0x60] sm:$0xf] %v359_v51 }
  0x6f   : > { %376 = vst [vmem:[%s1511_s18 + $0x68] sm:$0xf] %v360_v62 }
  0x9d   : > { %v383_v57 = vpop.permute.xlu0 %382 }
  0x9e   : > { %v1559_v63 = vmul.f32 %v1349_v30, %v383_v57  ;;  %v1562_v60 = vmul.f32 %v1351_v31, %v383_v57  ;;  %v1565_v49 = vmul.f32 %v1353_v32, %v383_v57  ;;  %v1573_v56 = vmul.f32 %v1355_v33, %v383_v57  ;;  %v329_v32 = vld.sshfl [vmem:[#allocation1 + $0x30] sm:$0xff pattern:$0x75316420]  ;;  %v1600_v15 = vpop.permute.xlu1 %534 }
  0x9f   : > { %v1576_v30 = vmul.f32 %v1357_v34, %v383_v57  ;;  %v1579_v31 = vmul.f32 %v1359_v35, %v383_v57  ;;  %v1587_v47 = vmul.f32 %v1361_v36, %v383_v57  ;;  %v1590_v33 = vmul.f32 %v1363_v37, %v383_v57  ;;  %v1596_v35 = vld [vmem:[%s1291_s12 + $0x58] sm:$0xff] }
  0xa0   : > { %v1593_v34 = vmul.f32 %v1365_v38, %v383_v57  ;;  %1876 = vst [vmem:[#allocation40_spill] sm:$0xff] %v1596_v35  ;;  %v1603_v36 = vmul.f32 %v1367_v39, %v383_v57  ;;  %v1606_v37 = vmul.f32 %v1369_v40, %v383_v57  ;;  %v1609_v38 = vmul.f32 %v1371_v41, %v383_v57  ;;  %v1623_v40 = vld [vmem:[%s1291_s12 + $0x70] sm:$0xff]  ;;  %v1626_v41 = vld [vmem:[%s1291_s12 + $0x78] sm:$0xff]  ;;  %s816_s12 = sadd.s32 %s944_s26, %s1304_s30 }
  0xa1   : > { %v358_v59 = vadd.f32 %v326_v11, %v1596_v35  ;;  %v445_v14 = vmul.f32 %v1373_v42, %v383_v57  ;;  %v446_v55 = vmul.f32 %v1375_v43, %v383_v57  ;;  %v447_v39 = vmul.f32 %v1377_v44, %v383_v57  ;;  %1879 = vst [vmem:[#allocation43_spill] sm:$0xff] %v1623_v40  ;;  %s945_s19 = sshll.u32 %s816_s12, 3 }
  0xa2   : > { %1880 = vst [vmem:[#allocation44_spill] sm:$0xff] %v1626_v41  ;;  %v448_v11 = vmul.f32 %v1379_v45, %v383_v57  ;;  %v361_v42 = vadd.f32 %v329_v32, %v1623_v40  ;;  %v362_v43 = vadd.f32 %v330_v28, %v1626_v41  ;;  %v585_v35 = vmul.f32 %v1445_v2, %v1600_v15  ;;  %v1884_v28 = vld [vmem:[#allocation17_spill] sm:$0xff]  ;;  %v1885_v41 = vld [vmem:[#allocation18_spill] sm:$0xff]  ;;  %v1886_v40 = vld [vmem:[#allocation19_spill] sm:$0xff]  ;;  %s818_s14 = scalar_lea.hbm %s1809_s4, %s945_s19 }
  0xa3   : > { %v586_v46 = vmul.f32 %v1447_v3, %v1600_v15  ;;  %v587_v10 = vmul.f32 %v1449_v4, %v1600_v15  ;;  %v588_v45 = vmul.f32 %v1451_v5, %v1600_v15  ;;  %374 = vst [vmem:[%s1511_s18 + $0x58] sm:$0xf] %v358_v59  ;;  %v589_v57 = vmul.f32 %v1453_v13, %v1600_v15  ;;  %v1881_v59 = vld [vmem:[#allocation14_spill] sm:$0xff]  ;;  %s822_s30 = sshll.u32 %s818_s14, 4  ;;  %s823_s30 = int_to_ptr.hbm [resolvable:$true] %s822_s30 }
  0xa4   : > { %v590_v54 = vmul.f32 %v1455_v16, %v1600_v15  ;;  %v591_v2 = vmul.f32 %v1457_v17, %v1600_v15  ;;  %v592_v3 = vmul.f32 %v1470_v52, %v1600_v15  ;;  %v593_v4 = vmul.f32 %v1479_v29, %v1600_v15  ;;  %377 = vst [vmem:[%s1511_s18 + $0x70] sm:$0xf] %v361_v42  ;;  %s1080_s28 = sshra.s32 %s823_s30, 4  ;;  %s1081_s28 = int_to_ptr.hbm [resolvable:$true] %s1080_s28 }
  0xa5   : > { %v594_v5 = vmul.f32 %v1483_v27, %v1600_v15  ;;  %v595_v13 = vmul.f32 %v1487_v12, %v1600_v15  ;;  %v596_v16 = vmul.f32 %v1497_v58, %v1600_v15  ;;  %v1883_v12 = vld [vmem:[#allocation16_spill] sm:$0xff]  ;;  %378 = vst [vmem:[%s1511_s18 + $0x78] sm:$0xf] %v362_v43  ;;  %s1082_s6 = scalar_lea.hbm %s1081_s28, 128  ;;  %p1087_p10 = scmp.lt.s32.totalorder %s1081_s28, %s1809_s4 }
  0xa6   : > { %v451_v44 = vpop.permute.xlu0 %450  ;;  %p1083_p6 = scmp.ne.s32.totalorder %s1081_s28, %s1082_s6  ;;  %p1088_p11 = scmp.lt.s32.totalorder %s1086_s29, %s1082_s6 }
  0xa7   : > { %v501_v17 = vmul.f32 %v1409_v18, %v451_v44  ;;  %v502_v1 = vmul.f32 %v1411_v19, %v451_v44  ;;  %v503_v52 = vmul.f32 %v1413_v20, %v451_v44  ;;  %v504_v51 = vmul.f32 %v1415_v21, %v451_v44  ;;  %v1888_v21 = vld [vmem:[#allocation21_spill] sm:$0xff] }
  0xa8   : > { %v505_v29 = vmul.f32 %v1417_v22, %v451_v44  ;;  %v506_v27 = vmul.f32 %v1881_v59, %v451_v44  ;;  %v507_v50 = vmul.f32 %v1882_v61, %v451_v44  ;;  %v508_v32 = vmul.f32 %v1883_v12, %v451_v44  ;;  %p1084_p7 = pnand %p1083_p6, %p1260_p9  ;;  %p1089_p13 = por %p1088_p11, %p1087_p10 }
  0xa9   : > { %v509_v58 = vmul.f32 %v1884_v28, %v451_v44  ;;  %v510_v18 = vmul.f32 %v1885_v41, %v451_v44  ;;  %v511_v19 = vmul.f32 %v1886_v40, %v451_v44  ;;  %v512_v20 = vmul.f32 %v1887_v0, %v451_v44 }
  0xaa   : > { %v513_v62 = vmul.f32 %v1888_v21, %v451_v44  ;;  %v514_v22 = vmul.f32 %v1889_v48, %v451_v44  ;;  %v515_v59 = vmul.f32 %v1890_v7, %v451_v44  ;;  %v516_v61 = vmul.f32 %v1891_v53, %v451_v44  ;;  %v1902_v21 = vld [vmem:[#allocation11_spill] sm:$0xff]  ;;  %p1085_p8 = pneg %p1084_p7 }
  0xab   : > { %v517_v12 = vadd.f32 %v501_v17, %v1559_v63  ;;  %v518_v42 = vadd.f32 %v502_v1, %v1562_v60  ;;  %v519_v28 = vadd.f32 %v503_v52, %v1565_v49  ;;  %v520_v41 = vadd.f32 %v504_v51, %v1573_v56 }
  0xac   : > { %v521_v40 = vadd.f32 %v505_v29, %v1576_v30  ;;  %v522_v0 = vadd.f32 %v506_v27, %v1579_v31  ;;  %v523_v43 = vadd.f32 %v507_v50, %v1587_v47  ;;  %v524_v48 = vadd.f32 %v508_v32, %v1590_v33  ;;  %p1090_p0 = pnand %p1089_p13, %p1085_p8 }
  0xad   : > { %v525_v7 = vadd.f32 %v509_v58, %v1593_v34  ;;  %v526_v53 = vadd.f32 %v510_v18, %v1603_v36  ;;  %v527_v63 = vadd.f32 %v511_v19, %v1606_v37  ;;  %v528_v60 = vadd.f32 %v512_v20, %v1609_v38  ;;  %v619_v34 = vpop.permute.xlu1 %618  ;;  %v1900_v58 = vld [vmem:[#allocation37_spill] sm:$0xff] }
  0xae   : > { %v529_v44 = vadd.f32 %v513_v62, %v445_v14  ;;  %v530_v49 = vadd.f32 %v514_v22, %v446_v55  ;;  %v531_v17 = vadd.f32 %v515_v59, %v447_v39  ;;  %v532_v56 = vadd.f32 %v516_v61, %v448_v11 }
  0xaf   : > { %v597_v30 = vmul.f32 %v1499_v25, %v1600_v15  ;;  %v598_v31 = vmul.f32 %v1503_v26, %v1600_v15  ;;  %v599_v47 = vmul.f32 %v1505_v24, %v1600_v15  ;;  %v600_v33 = vmul.f32 %v1507_v23, %v1600_v15  ;;  %v1894_v15 = vld [vmem:[#allocation33_spill] sm:$0xff] }
  0xb0   : > { %v601_v36 = vadd.f32 %v585_v35, %v517_v12  ;;  %v602_v37 = vadd.f32 %v586_v46, %v518_v42  ;;  %v603_v38 = vadd.f32 %v587_v10, %v519_v28  ;;  %v604_v14 = vadd.f32 %v588_v45, %v520_v41  ;;  %v1895_v46 = vld [vmem:[#allocation34_spill] sm:$0xff]  ;;  %v1905_v41 = vld [vmem:[#allocation12_spill] sm:$0xff] }
  0xb1   : > { %v605_v55 = vadd.f32 %v589_v57, %v521_v40  ;;  %v606_v39 = vadd.f32 %v590_v54, %v522_v0  ;;  %v607_v11 = vadd.f32 %v591_v2, %v523_v43  ;;  %v608_v1 = vadd.f32 %v592_v3, %v524_v48  ;;  %v1897_v3 = vld [vmem:[#allocation35_spill] sm:$0xff] }
  0xb2   : > { %v609_v52 = vadd.f32 %v593_v4, %v525_v7  ;;  %v610_v25 = vadd.f32 %v594_v5, %v526_v53  ;;  %v611_v51 = vadd.f32 %v595_v13, %v527_v63  ;;  %v1892_v26 = vperm.slane %v1317_v8, 7  ;;  %v1898_v8 = vld [vmem:[#allocation10_spill] sm:$0xff]  ;;  %v1908_v63 = vld [vmem:[#allocation13_spill] sm:$0xff] }
  0xb3   : > { %v1893_v24 = vperm.slane %v1319_v9, 3  ;;  %v669_v23 = vmul.f32 %v1541_v6, %v619_v34  ;;  %v670_v35 = vmul.f32 %v1894_v15, %v619_v34  ;;  %v671_v10 = vmul.f32 %v1895_v46, %v619_v34 }
  0xb4   : > { %v658_v29 = vperm.slane %v1892_v26, 3  ;;  %v612_v45 = vadd.f32 %v596_v16, %v528_v60  ;;  %v613_v57 = vadd.f32 %v597_v30, %v529_v44  ;;  %v1896_v54 = vperm.slane %v1319_v9, 7 }
  0xb5   : > { %v659_v27 = vperm.slane %v1893_v24, 3  ;;  %v672_v4 = vmul.f32 %v1897_v3, %v619_v34  ;;  %v614_v5 = vadd.f32 %v598_v31, %v530_v49  ;;  %v615_v13 = vadd.f32 %v599_v47, %v531_v17  ;;  %v769_v3 = vpop.permute.xlu2 %768 }
  0xb6   : > { %v660_v2 = vperm.slane %v1896_v54, 3  ;;  %v1899_v50 = vperm.slane %v1898_v8, 3  ;;  %v673_v18 = vmul.f32 %v1900_v58, %v619_v34  ;;  %v616_v19 = vadd.f32 %v600_v33, %v532_v56 }
  0xb7   : > { %v1901_v6 = vperm.slane %v1898_v8, 7  ;;  %v1903_v62 = vperm.slane %v1902_v21, 3  ;;  %v674_v22 = vmul.f32 %v658_v29, %v619_v34  ;;  %v675_v59 = vmul.f32 %v659_v27, %v619_v34  ;;  %v1912_v8 = vld [vmem:[#allocation26_spill] sm:$0xff] }
  0xb8   : > { %v661_v32 = vperm.slane %v1899_v50, 3  ;;  %v685_v9 = vadd.f32 %v669_v23, %v601_v36  ;;  %v686_v61 = vadd.f32 %v670_v35, %v602_v37  ;;  %v687_v12 = vadd.f32 %v671_v10, %v603_v38 }
  0xb9   : > { %v662_v20 = vperm.slane %v1901_v6, 3  ;;  %v663_v16 = vperm.slane %v1903_v62, 3  ;;  %v1904_v42 = vperm.slane %v1902_v21, 7  ;;  %v1906_v40 = vperm.slane %v1905_v41, 3 }
  0xba   : > { %v676_v43 = vmul.f32 %v660_v2, %v619_v34  ;;  %v688_v48 = vadd.f32 %v672_v4, %v604_v14  ;;  %v1907_v7 = vperm.slane %v1905_v41, 7  ;;  %v1909_v60 = vperm.slane %v1908_v63, 3 }
  0xbb   : > { %v664_v28 = vperm.slane %v1904_v42, 3  ;;  %v665_v0 = vperm.slane %v1906_v40, 3  ;;  %v677_v49 = vmul.f32 %v661_v32, %v619_v34  ;;  %v689_v17 = vadd.f32 %v673_v18, %v605_v55  ;;  %v1913_v32 = vld [vmem:[#allocation27_spill] sm:$0xff]  ;;  %v1918_v40 = vld [vmem:[#allocation32_spill] sm:$0xff] }
  0xbc   : > { %v666_v53 = vperm.slane %v1907_v7, 3  ;;  %v667_v44 = vperm.slane %v1909_v60, 3  ;;  %v1910_v56 = vperm.slane %v1908_v63, 7  ;;  %v678_v31 = vmul.f32 %v662_v20, %v619_v34  ;;  %v1914_v20 = vld [vmem:[#allocation28_spill] sm:$0xff]  ;;  %v1920_v60 = vld [vmem:[#allocation38_spill] sm:$0xff] }
  0xbd   : > { %v679_v47 = vmul.f32 %v663_v16, %v619_v34  ;;  %v690_v33 = vadd.f32 %v674_v22, %v606_v39  ;;  %v691_v36 = vadd.f32 %v675_v59, %v607_v11  ;;  %v717_v37 = vrot.slane %v685_v9, 4  ;;  %v1911_v39 = vld [vmem:[#allocation25_spill] sm:$0xff]  ;;  %v1916_v9 = vld [vmem:[#allocation30_spill] sm:$0xff] }
  0xbe   : > { %v668_v30 = vperm.slane %v1910_v56, 3  ;;  %v718_v38 = vrot.slane %v686_v61, 4  ;;  %v719_v26 = vrot.slane %v687_v12, 4  ;;  %v680_v29 = vmul.f32 %v664_v28, %v619_v34  ;;  %v1917_v12 = vld [vmem:[#allocation31_spill] sm:$0xff] }
  0xbf   : > { %v681_v14 = vmul.f32 %v665_v0, %v619_v34  ;;  %v692_v24 = vadd.f32 %v676_v43, %v608_v1  ;;  %v720_v27 = vrot.slane %v688_v48, 4  ;;  %v682_v23 = vmul.f32 %v666_v53, %v619_v34 }
  0xc0   : > { %v683_v15 = vmul.f32 %v667_v44, %v619_v34  ;;  %v693_v35 = vadd.f32 %v677_v49, %v609_v52  ;;  %v721_v46 = vrot.slane %v689_v17, 4  ;;  %v684_v10 = vmul.f32 %v668_v30, %v619_v34  ;;  %v1915_v34 = vld [vmem:[#allocation29_spill] sm:$0xff]  ;;  %v1921_v17 = vld [vmem:[#allocation39_spill] sm:$0xff] }
  0xc1   : > { %v694_v55 = vadd.f32 %v678_v31, %v610_v25  ;;  %v695_v54 = vadd.f32 %v679_v47, %v611_v51  ;;  %v722_v2 = vrot.slane %v690_v33, 4  ;;  %v723_v4 = vrot.slane %v691_v36, 4  ;;  %v1922_v47 = vld [vmem:[#allocation40_spill] sm:$0xff] }
  0xc2   : > { %v749_v11 = vadd.f32 %v717_v37, %v1911_v39  ;;  %v750_v50 = vadd.f32 %v718_v38, %v1912_v8  ;;  %v751_v58 = vadd.f32 %v719_v26, %v1913_v32  ;;  %v696_v18 = vadd.f32 %v680_v29, %v612_v45  ;;  %v1923_v37 = vld [vmem:[#allocation41_spill] sm:$0xff]  ;;  %v1924_v29 = vld [vmem:[#allocation42_spill] sm:$0xff] }
  0xc3   : > { %v697_v1 = vadd.f32 %v681_v14, %v613_v57  ;;  %v724_v6 = vrot.slane %v692_v24, 4  ;;  %v752_v21 = vadd.f32 %v720_v27, %v1914_v20  ;;  %v698_v52 = vadd.f32 %v682_v23, %v614_v5  ;;  %v1925_v27 = vld [vmem:[#allocation43_spill] sm:$0xff] }
  0xc4   : > { %v725_v62 = vrot.slane %v693_v35, 4  ;;  %v753_v25 = vadd.f32 %v721_v46, %v1915_v34  ;;  %v770_v51 = vrot.slane %v769_v3, 4  ;;  %v699_v16 = vadd.f32 %v683_v15, %v615_v13  ;;  %v1919_v13 = vld [vmem:[#allocation36_spill] sm:$0xff] }
  0xc5   : > { %v726_v22 = vrot.slane %v694_v55, 4  ;;  %v727_v59 = vrot.slane %v695_v54, 4  ;;  %v754_v61 = vadd.f32 %v722_v2, %v1916_v9  ;;  %v755_v42 = vadd.f32 %v723_v4, %v1917_v12  ;;  %v1926_v35 = vld [vmem:[#allocation44_spill] sm:$0xff] }
  0xc6   : > { %v772_v45 = vadd.f32 %v770_v51, %v749_v11  ;;  %v773_v57 = vadd.f32 %v770_v51, %v750_v50  ;;  %v774_v28 = vadd.f32 %v770_v51, %v751_v58  ;;  %v700_v41 = vadd.f32 %v684_v10, %v616_v19 }
  0xc7   : > { %v728_v5 = vrot.slane %v696_v18, 4  ;;  %v756_v0 = vadd.f32 %v724_v6, %v1918_v40  ;;  %v775_v43 = vadd.f32 %v770_v51, %v752_v21  ;;  %v729_v48 = vrot.slane %v697_v1, 4 }
  0xc8   : > { %v757_v7 = vadd.f32 %v725_v62, %v1919_v13  ;;  %v776_v53 = vadd.f32 %v770_v51, %v753_v25  ;;  %788 = vst [vmem:[%s1511_s18] sm:$0xf0] %v772_v45  ;;  %v730_v63 = vrot.slane %v698_v52, 4  ;;  %v758_v44 = vadd.f32 %v726_v22, %v1920_v60 }
  0xc9   : > { %v777_v49 = vadd.f32 %v770_v51, %v754_v61  ;;  %789 = vst [vmem:[%s1511_s18 + $0x8] sm:$0xf0] %v773_v57  ;;  %v731_v19 = vrot.slane %v699_v16, 4  ;;  %v759_v56 = vadd.f32 %v727_v59, %v1921_v17  ;;  %v778_v30 = vadd.f32 %v770_v51, %v755_v42 }
  0xca   : > { %790 = vst [vmem:[%s1511_s18 + $0x10] sm:$0xf0] %v774_v28  ;;  %v732_v31 = vrot.slane %v700_v41, 4  ;;  %v760_v33 = vadd.f32 %v728_v5, %v1922_v47  ;;  %v779_v36 = vadd.f32 %v770_v51, %v756_v0  ;;  %v761_v38 = vadd.f32 %v729_v48, %v1923_v37 }
  0xcb   : > { %791 = vst [vmem:[%s1511_s18 + $0x18] sm:$0xf0] %v775_v43  ;;  %v780_v26 = vadd.f32 %v770_v51, %v757_v7  ;;  %v762_v14 = vadd.f32 %v730_v63, %v1924_v29  ;;  %v781_v24 = vadd.f32 %v770_v51, %v758_v44  ;;  %v763_v23 = vadd.f32 %v731_v19, %v1925_v27 }
  0xcc   : > { %792 = vst [vmem:[%s1511_s18 + $0x20] sm:$0xf0] %v776_v53  ;;  %v782_v15 = vadd.f32 %v770_v51, %v759_v56  ;;  %v764_v46 = vadd.f32 %v732_v31, %v1926_v35  ;;  %v783_v10 = vadd.f32 %v770_v51, %v760_v33  ;;  %v784_v55 = vadd.f32 %v770_v51, %v761_v38 }
  0xcd   : > { %793 = vst [vmem:[%s1511_s18 + $0x28] sm:$0xf0] %v777_v49  ;;  %v785_v54 = vadd.f32 %v770_v51, %v762_v14  ;;  %v786_v2 = vadd.f32 %v770_v51, %v763_v23 }
  0xce   : > { %794 = vst [vmem:[%s1511_s18 + $0x30] sm:$0xf0] %v778_v30  ;;  %v787_v3 = vadd.f32 %v770_v51, %v764_v46 }
  0xcf   : > { %795 = vst [vmem:[%s1511_s18 + $0x38] sm:$0xf0] %v779_v36 }
  0xd0   : > { %796 = vst [vmem:[%s1511_s18 + $0x40] sm:$0xf0] %v780_v26 }
  0xd1   : > { %797 = vst [vmem:[%s1511_s18 + $0x48] sm:$0xf0] %v781_v24 }
  0xd2   : > { %798 = vst [vmem:[%s1511_s18 + $0x50] sm:$0xf0] %v782_v15 }
  0xd3   : > { %799 = vst [vmem:[%s1511_s18 + $0x58] sm:$0xf0] %v783_v10 }
  0xd4   : > { %800 = vst [vmem:[%s1511_s18 + $0x60] sm:$0xf0] %v784_v55 }
  0xd5   : > { %801 = vst [vmem:[%s1511_s18 + $0x68] sm:$0xf0] %v785_v54 }
  0xd6   : > { %802 = vst [vmem:[%s1511_s18 + $0x70] sm:$0xf0] %v786_v2 }
  0xd7   : > { %803 = vst [vmem:[%s1511_s18 + $0x78] sm:$0xf0] %v787_v3 }
  0xd8   : > { %1093 = shalt.err (!%p1090_p0)
}
  0xd9   : > { %950 = dma.vmem_to_hbm [thread:$0]  (%p1260_p9), %s821_s23, 2048, %s823_s30, %s805_s24  }
  0xda PF: > { %p961_p1 = scmp.ge.s32.totalorder %s1164_s22, 2  ;;  %s834_s11 = sand.u32 1, %s1136_s15  }
  0xdb   : > { %s835_s18 = scalar_lea.sflag [#allocation4], %s834_s11 }
  0xdc   : > { %p957_p2 = pnand %p961_p1, %p1266_p12 }
  0xde   : > { %p958_p4 = pneg %p957_p2 }
  0xe0   : > { %1131 = dma.done.wait (%p958_p4), %s835_s18, 2048  }
  0xe1   : > { %1133 = vsyncadd (%p958_p4), %s835_s18, 4294965248  ;;  %s20_s22 = sadd.s32 1, %s1164_s22   ;;  %s1927_s5 = sld [smem:[#allocation8_spill]] }
  0xe2   : > { %p17_p3 = scmp.ge.s32.totalorder %s20_s22, 6   ;;  %s1928_s12 = sld [smem:[#allocation9_spill]] }
  0xe3   : > { %s1929_s15 = smov %s1140_s16  ;;  %s1930_s16 = smov %s1144_s17 }
  0xe4   : > { %s1931_s17 = smov %s1273_s10  ;;  %s1932_s18 = smov %s1156_s20 }
  0xe5   : > { %s1933_s19 = smov %s1160_s21  ;;  %19 = sbr.rel (!%p17_p3) target bundleno = 7 (0x7), region = 87 }
  0xe7   : > { %s1934_s20 = smov %s1927_s5 }
  0xe8   : > { %s1935_s21 = smov %s1928_s12 }
  0xea   :  { %841 = vsyncpa [#allocation3], 1 }
  0xeb   :  { %843 = vsyncpa [#allocation3 + $0x1], 1 }
  0xec   :  { %844 = vsyncpa [#allocation4], 1 }
  0xed   :  { %846 = vsyncpa [#allocation4 + $0x1], 1 }

</bundles_post_ra>
